<compile_context>
chip_gen: v7x
topology: tpu7x:2x2x1
jax: 0.10.0
libtpu: 0.0.40
codegen_flags: <defaults>
</compile_context>

<pallas_src>
from functools import partial

import jax
import jax.numpy as jnp
from jax.experimental import pallas as pl
from jax.experimental.pallas import tpu as pltpu


# ---------------------------------------------------------------------------
# Tiled linear layer:  out = x @ w + b
# ---------------------------------------------------------------------------
def linear_kernel(x_ref, w_ref, b_ref, o_ref):
    acc = jnp.dot(x_ref[...], w_ref[...], preferred_element_type=jnp.float32)
    o_ref[...] = (acc + b_ref[...].astype(jnp.float32)).astype(o_ref.dtype)


def linear(x2d, w, b, *, block_m=256):
    """x2d: (M, K), w: (K, N), b: (N,)  ->  (M, N)."""
    M, K = x2d.shape
    Kw, Nout = w.shape
    assert K == Kw

    tm = min(block_m, M)
    m_pad = pl.cdiv(M, tm) * tm
    if m_pad != M:
        x2d = jnp.pad(x2d, ((0, m_pad - M), (0, 0)))

    out = pl.pallas_call(
        linear_kernel,
        out_shape=jax.ShapeDtypeStruct((m_pad, Nout), x2d.dtype),
        grid=(m_pad // tm,),
        in_specs=[
            pl.BlockSpec((tm, K), lambda i: (i, 0)),        # row tile
            pl.BlockSpec((K, Nout), lambda i: (0, 0)),      # grid-invariant
            pl.BlockSpec((1, Nout), lambda i: (0, 0)),      # grid-invariant
        ],
        out_specs=pl.BlockSpec((tm, Nout), lambda i: (i, 0)),
        compiler_params=pltpu.CompilerParams(
            dimension_semantics=("parallel",)),
        cost_estimate=pl.CostEstimate(
            flops=2 * m_pad * K * Nout,
            transcendentals=0,
            bytes_accessed=4 * (m_pad * K + K * Nout + m_pad * Nout)),
    )(x2d, w, b.reshape(1, Nout))
    return out[:M]


# ---------------------------------------------------------------------------
# Flash-attention core (online softmax), grid = (B*heads, q_tiles, kv_tiles)
# ---------------------------------------------------------------------------
def flash_attn_kernel(q_ref, k_ref, v_ref, o_ref, m_sc, l_sc, acc_sc, *, scale):
    kv_i = pl.program_id(2)

    @pl.when(kv_i == 0)
    def _init():
        m_sc[...] = jnp.full_like(m_sc, -jnp.inf)
        l_sc[...] = jnp.zeros_like(l_sc)
        acc_sc[...] = jnp.zeros_like(acc_sc)

    q = q_ref[0].astype(jnp.float32) * scale                       # (tq, hd)
    k = k_ref[0].astype(jnp.float32)                               # (tk, hd)
    s = jax.lax.dot_general(q, k, (((1,), (1,)), ((), ())),
                            preferred_element_type=jnp.float32)    # (tq, tk)

    m_prev = m_sc[...]
    m_new = jnp.maximum(m_prev, jnp.max(s, axis=-1, keepdims=True))
    alpha = jnp.exp(m_prev - m_new)
    p = jnp.exp(s - m_new)                                         # (tq, tk)
    l_sc[...] = alpha * l_sc[...] + jnp.sum(p, axis=-1, keepdims=True)
    acc_sc[...] = alpha * acc_sc[...] + jnp.dot(
        p.astype(v_ref.dtype), v_ref[0], preferred_element_type=jnp.float32)
    m_sc[...] = m_new

    @pl.when(kv_i == pl.num_programs(2) - 1)
    def _finalize():
        o_ref[0] = (acc_sc[...] / l_sc[...]).astype(o_ref.dtype)


def flash_attention(q, k, v, *, scale, block_q=128, block_kv=128):
    """q, k, v: (B*heads, N, hd)  ->  (B*heads, N, hd)."""
    BH, N, hd = q.shape
    tq = block_q if (block_q <= N and N % block_q == 0) else N
    tk = block_kv if (block_kv <= N and N % block_kv == 0) else N

    return pl.pallas_call(
        partial(flash_attn_kernel, scale=scale),
        out_shape=jax.ShapeDtypeStruct((BH, N, hd), q.dtype),
        grid=(BH, N // tq, N // tk),
        in_specs=[
            pl.BlockSpec((1, tq, hd), lambda b, qi, ki: (b, qi, 0)),
            pl.BlockSpec((1, tk, hd), lambda b, qi, ki: (b, ki, 0)),
            pl.BlockSpec((1, tk, hd), lambda b, qi, ki: (b, ki, 0)),
        ],
        out_specs=pl.BlockSpec((1, tq, hd), lambda b, qi, ki: (b, qi, 0)),
        scratch_shapes=[
            pltpu.VMEM((tq, 1), jnp.float32),    # running max
            pltpu.VMEM((tq, 1), jnp.float32),    # running denom
            pltpu.VMEM((tq, hd), jnp.float32),   # running output accumulator
        ],
        compiler_params=pltpu.CompilerParams(
            dimension_semantics=("parallel", "parallel", "arbitrary")),
        cost_estimate=pl.CostEstimate(
            flops=4 * BH * N * N * hd,
            transcendentals=BH * N * N,
            bytes_accessed=4 * 4 * BH * N * hd),
    )(q, k, v)


# ---------------------------------------------------------------------------
# Full Attention.forward
# ---------------------------------------------------------------------------
def attention_forward(x, w_qkv, b_qkv, w_proj, b_proj, *, num_heads,
                      qk_scale=None, block_m=256, block_q=128, block_kv=128):
    """x: (B, N, C).  Weights in PyTorch nn.Linear layout (out, in)."""
    B, N, C = x.shape
    D = w_qkv.shape[0] // 3
    hd = D // num_heads
    scale = qk_scale if qk_scale is not None else hd ** (-0.5)

    # QKV projection (tiled Pallas matmul).
    qkv = linear(x.reshape(B * N, C), w_qkv.T, b_qkv, block_m=block_m)

    # Head split (pure layout; mirrors torch reshape(B,N,3,H,hd).permute(2,0,3,1,4)).
    qkv = qkv.reshape(B, N, 3, num_heads, hd)
    q = qkv[:, :, 0].transpose(0, 2, 1, 3).reshape(B * num_heads, N, hd)
    k = qkv[:, :, 1].transpose(0, 2, 1, 3).reshape(B * num_heads, N, hd)
    v = qkv[:, :, 2].transpose(0, 2, 1, 3).reshape(B * num_heads, N, hd)

    # Scaled-dot-product attention with online softmax (scale applied in-kernel).
    o = flash_attention(q, k, v, scale=scale, block_q=block_q, block_kv=block_kv)

    # Merge heads + output projection.
    o = o.reshape(B, num_heads, N, hd).transpose(0, 2, 1, 3).reshape(B * N, D)
    y = linear(o, w_proj.T, b_proj, block_m=block_m)
    return y.reshape(B, N, C)


# ---------------------------------------------------------------------------
# Pure-JAX reference (mirrors the PyTorch module line by line)
# ---------------------------------------------------------------------------
def _reference(x, w_qkv, b_qkv, w_proj, b_proj, *, num_heads, qk_scale=None):
    B, N, C = x.shape
    D = w_qkv.shape[0] // 3
    hd = D // num_heads
    scale = qk_scale if qk_scale is not None else hd ** (-0.5)

    qkv = x @ w_qkv.T + b_qkv
    qkv = qkv.reshape(B, N, 3, num_heads, hd).transpose(2, 0, 3, 1, 4)
    q, k, v = qkv[0], qkv[1], qkv[2]
    q = q * scale
    attn = q @ jnp.swapaxes(k, -2, -1)
    attn = jax.nn.softmax(attn, axis=-1)
    out = (attn @ v).transpose(0, 2, 1, 3).reshape(B, N, D)
    return out @ w_proj.T + b_proj


if __name__ == "__main__":
    jax.config.update("jax_default_matmul_precision", "highest")

    # Small, module-consistent shapes: B=2, N=64 tokens, dim=32, 4 heads (hd=8).
    B, N, C = 2, 64, 32
    num_heads = 4
    D = C  # all_head_dim == dim (attn_head_dim=None)

    key = jax.random.PRNGKey(0)
    kx, kwq, kwp, kbp = jax.random.split(key, 4)

    x = jax.random.normal(kx, (B, N, C), dtype=jnp.float32)
    w_qkv = jax.random.normal(kwq, (3 * D, C), dtype=jnp.float32) * 0.05
    b_qkv = jnp.zeros((3 * D,), dtype=jnp.float32)        # qkv_bias=False default
    w_proj = jax.random.normal(kwp, (C, D), dtype=jnp.float32) * 0.05
    b_proj = jax.random.normal(kbp, (C,), dtype=jnp.float32) * 0.05

    out = attention_forward(x, w_qkv, b_qkv, w_proj, b_proj,
                            num_heads=num_heads,
                            block_m=64, block_q=32, block_kv=32)
    out = jax.block_until_ready(out)

    ref = _reference(x, w_qkv, b_qkv, w_proj, b_proj, num_heads=num_heads)
    assert out.shape == (B, N, C), out.shape
    assert jnp.allclose(out, ref, atol=1e-3, rtol=1e-3), \
        float(jnp.max(jnp.abs(out - ref)))

    print("KERNEL_OK")
</pallas_src>

<mosaic_0001>
module attributes {stable_mosaic.version = 11 : i64} {
  func.func @linear_kernel(%arg0: i32, %arg1: memref<64x32xf32, #tpu.memory_space<vmem>>, %arg2: memref<32x96xf32, #tpu.memory_space<vmem>>, %arg3: memref<1x96xf32, #tpu.memory_space<vmem>>, %arg4: memref<64x96xf32, #tpu.memory_space<vmem>>) attributes {dimension_semantics = [#tpu.dimension_semantics<parallel>], iteration_bounds = array<i64: 2>, scalar_prefetch = 0 : i64, scratch_operands = 0 : i64, tpu.core_type = #tpu.core_type<tc>, window_params = [{transform_indices = @transform_0, window_bounds = array<i64: 64, 32>}, {pipeline_mode = #tpu.pipeline_mode<synchronous>, transform_indices = @transform_1, window_bounds = array<i64: 32, 96>}, {pipeline_mode = #tpu.pipeline_mode<synchronous>, transform_indices = @transform_2, window_bounds = array<i64: 1, 96>}, {transform_indices = @transform_3, window_bounds = array<i64: 64, 96>}]} {
    %c0 = arith.constant 0 : index
    %c0_0 = arith.constant 0 : index
    %0 = vector.load %arg1[%c0, %c0_0] : memref<64x32xf32, #tpu.memory_space<vmem>>, vector<64x32xf32>
    %c0_1 = arith.constant 0 : index
    %c0_2 = arith.constant 0 : index
    %1 = vector.load %arg2[%c0_1, %c0_2] : memref<32x96xf32, #tpu.memory_space<vmem>>, vector<32x96xf32>
    %cst = arith.constant dense<0.000000e+00> : vector<64x96xf32>
    %2 = tpu.matmul %0, %1, %cst {dimension_numbers = #tpu.dot_dimension_numbers<[1], [0], [0], [1], [0, 0, 1, 1], [], []>, precision = #tpu.contract_precision<fp32>} : vector<64x32xf32>, vector<32x96xf32>, vector<64x96xf32> -> vector<64x96xf32>
    %c0_3 = arith.constant 0 : index
    %c0_4 = arith.constant 0 : index
    %3 = vector.load %arg3[%c0_3, %c0_4] : memref<1x96xf32, #tpu.memory_space<vmem>>, vector<1x96xf32>
    %4 = vector.broadcast %3 : vector<1x96xf32> to vector<64x96xf32>
    %5 = arith.addf %2, %4 : vector<64x96xf32>
    %c0_5 = arith.constant 0 : index
    %c0_6 = arith.constant 0 : index
    %6 = vector.load %arg4[%c0_5, %c0_6] : memref<64x96xf32, #tpu.memory_space<vmem>>, vector<64x96xf32>
    tpu.vector_store %arg4[%c0_5, %c0_6], %5 {strides = array<i32>} : memref<64x96xf32, #tpu.memory_space<vmem>>, vector<64x96xf32>,
    return
  }
  func.func @transform_0(%arg0: i32) -> (i32, i32) {
    %c0_i32 = arith.constant 0 : i32
    %c0_i32_0 = arith.constant 0 : i32
    return %arg0, %c0_i32 : i32, i32
  }
  func.func @transform_1(%arg0: i32) -> (i32, i32) {
    %c0_i32 = arith.constant 0 : i32
    %c0_i32_0 = arith.constant 0 : i32
    %c0_i32_1 = arith.constant 0 : i32
    return %c0_i32, %c0_i32_0 : i32, i32
  }
  func.func @transform_2(%arg0: i32) -> (i32, i32) {
    %c0_i32 = arith.constant 0 : i32
    %c0_i32_0 = arith.constant 0 : i32
    %c0_i32_1 = arith.constant 0 : i32
    return %c0_i32, %c0_i32_0 : i32, i32
  }
  func.func @transform_3(%arg0: i32) -> (i32, i32) {
    %c0_i32 = arith.constant 0 : i32
    %c0_i32_0 = arith.constant 0 : i32
    return %arg0, %c0_i32 : i32, i32
  }
}

</mosaic_0001>

<bundles_post_ra>
// kernel: tpu_custom_call.1
= control target key start
LH: loop header
LB: loop body
LE: loop exit
PB: predicated region body
PF: predicated region fallthrough
CT: control target
= control target key end

     0   :  { %s1405_s12 = smov 0   ;;  %s1597_s0 = inlined_call_operand.vmem [shape: f32[128,32], index: 0, kind: input, shape index: {}]   ;;  %s1598_s1 = inlined_call_operand.vmem [shape: f32[32,96], index: 1, kind: input, shape index: {}]   ;;  %s1599_s2 = inlined_call_operand.vmem [shape: f32[1,96], index: 2, kind: input, shape index: {}]   ;;  %s1600_s3 = inlined_call_operand.vmem [shape: f32[128,96], index: 3, kind: output, shape index: {}]  }
   0x1 LB: > { %s1069_s13 = sadd.s32 4294967295, %s1383_s12   ;;  %p1073_p0 = scmp.ge.s32.totalorder %s1383_s12, 1  ;;  %s1383_s12 = sphi %s1405_s12, %s13_s12  }
   0x2   : > { %p138_p1 = scmp.lt.s32.totalorder %s1383_s12, 3 }
   0x4   : > { %p139_p2 = pnand %p1073_p0, %p138_p1 }
   0x5   : > { %v182_v0 = vld [vmem:[%s1598_s1] sm:$0xff] (!%p139_p2)  ;;  %v183_v1 = vld [vmem:[%s1598_s1 + $0x8] sm:$0xff] (!%p139_p2)  ;;  %v184_v2 = vld [vmem:[%s1598_s1 + $0x10] sm:$0xff] (!%p139_p2)  ;;  %s1074_s20 = sshll.u32 (!%p139_p2), %s1069_s13, 3  ;;  %vm193_vm0 = vcmask (!%p139_p2), 261120   ;;  %vm1004_vm1 = vcmask (!%p139_p2), 785408  }
   0x6   : > { %142 = sbr.rel (%p139_p2) target bundleno = 291 (0x123), region = 32  ;;  %v219_v3 = vand.u32 (!%p139_p2), 4294901760, %v182_v0  ;;  %v222_v4 = vand.u32 (!%p139_p2), 4294901760, %v183_v1  ;;  %v185_v5 = vld [vmem:[%s1598_s1 + $0x18] sm:$0xff] (!%p139_p2)  ;;  %v225_v6 = vand.u32 (!%p139_p2), 4294901760, %v184_v2  ;;  %p163_p3 = scmp.lt.s32.totalorder (!%p139_p2), %s1074_s20, 15 }
   0x7   : > { %v228_v7 = vand.u32 (!%p139_p2), 4294901760, %v185_v5 }
   0x8   : > { %v1425_v8 = vpack.c.bf16 (!%p139_p2), %v222_v4, %v219_v3  ;;  %v1429_v9 = vsub.f32 (!%p139_p2), %v182_v0, %v219_v3  ;;  %v1431_v10 = vsub.f32 (!%p139_p2), %v183_v1, %v222_v4  ;;  %v1433_v11 = vsub.f32 (!%p139_p2), %v184_v2, %v225_v6 }
   0x9   : > { %v1435_v12 = vpack.c.bf16 (!%p139_p2), %v228_v7, %v225_v6  ;;  %v1437_v13 = vsub.f32 (!%p139_p2), %v185_v5, %v228_v7 }
   0xa   : > { %1298 = vmatprep.subr.bf16.mxu0 (!%p139_p2), %v1425_v8  ;;  %1274 = vmatprep.subr.bf16.mxu1 (!%p139_p2), %v1425_v8  ;;  %v370_v14 = vand.u32 (!%p139_p2), 4294901760, %v1429_v9  ;;  %v377_v15 = vand.u32 (!%p139_p2), 4294901760, %v1431_v10  ;;  %v384_v16 = vand.u32 (!%p139_p2), 4294901760, %v1433_v11 }
   0xb   : > { %1300 = vmatpush3.bf16.msra.mxu0 (!%p139_p2), %v1425_v8  ;;  %1276 = vmatpush3.bf16.msra.mxu1 (!%p139_p2), %v1425_v8  ;;  %v391_v23 = vand.u32 (!%p139_p2), 4294901760, %v1437_v13 }
   0xc   : > { %1302 = vmatprep.subr.bf16.mxu0 (!%p139_p2), %v1435_v12  ;;  %1278 = vmatprep.subr.bf16.mxu1 (!%p139_p2), %v1435_v12  ;;  %v371_v19 = vsub.f32 (!%p139_p2), %v1429_v9, %v370_v14  ;;  %v378_v20 = vsub.f32 (!%p139_p2), %v1431_v10, %v377_v15  ;;  %v1305_v22 = vpack.c.bf16 (!%p139_p2), %v377_v15, %v370_v14 }
   0xd   : > { %s1602_s20 = smov (!%p163_p3, %s1074_s20), 15  ;;  %v385_v30 = vsub.f32 %v1433_v11, %v384_v16  ;;  %v392_v51 = vsub.f32 %v1437_v13, %v391_v23  ;;  %v1309_v15 = vpack.c.bf16 %v391_v23, %v384_v16  ;;  %v1289_v16 = vpack.c.bf16 %v1431_v10, %v1429_v9 }
   0xe   : > { %s1075_s23 = sshll.u32 %s1602_s20, 3  ;;  %v372_v33 = vand.u32 4294901760, %v371_v19  ;;  %v379_v34 = vand.u32 4294901760, %v378_v20  ;;  %v1293_v9 = vpack.c.bf16 %v1437_v13, %v1433_v11  ;;  %v1078_v11 = vld [vmem:[%s1599_s2] ss:$0 sm:$0xff] }
   0xf   : > { %s1452_s26 = scalar_lea.vmem %s1597_s0, %s1075_s23  ;;  %1304 = vmatpush3.bf16.msra.mxu0 %v1435_v12  ;;  %1280 = vmatpush3.bf16.msra.mxu1 %v1435_v12  ;;  %v386_v47 = vand.u32 4294901760, %v385_v30  ;;  %v393_v59 = vand.u32 4294901760, %v392_v51  ;;  %s1576_s4 = scalar_lea.vmem %s1600_s3, %s1075_s23 }
  0x10   : > { %v174_v17 = vld [vmem:[%s1452_s26] sm:$0xff]  ;;  %v175_v18 = vld [vmem:[%s1452_s26 + $0x8] sm:$0xff]  ;;  %v176_v21 = vld [vmem:[%s1452_s26 + $0x10] sm:$0xff]  ;;  %v1281_v41 = vpack.c.bf16 %v379_v34, %v372_v33  ;;  %1306 = vmatprep.subr.bf16.mxu0 %v1305_v22 }
  0x11   : > { %v195_v24 = vsel %vm193_vm0, %v174_v17, 0  ;;  %v198_v25 = vsel %vm193_vm0, %v175_v18, 0  ;;  %v201_v26 = vsel %vm193_vm0, %v176_v21, 0  ;;  %v177_v27 = vld [vmem:[%s1452_s26 + $0x18] sm:$0xff]  ;;  %v178_v28 = vld [vmem:[%s1452_s26 + $0x20] sm:$0xff]  ;;  %v179_v29 = vld [vmem:[%s1452_s26 + $0x28] sm:$0xff]  ;;  %v1285_v6 = vpack.c.bf16 %v393_v59, %v386_v47 }
  0x12   : > { %v1471_v31 = vand.u32 4294901760, %v195_v24  ;;  %v1473_v32 = vand.u32 4294901760, %v198_v25  ;;  %v1477_v35 = vand.u32 4294901760, %v201_v26  ;;  %v204_v36 = vsel %vm193_vm0, %v177_v27, 0  ;;  %v180_v43 = vld [vmem:[%s1452_s26 + $0x30] sm:$0xff]  ;;  %1282 = vmatprep.subr.bf16.mxu1 %v1281_v41  ;;  %v181_v0 = vld [vmem:[%s1452_s26 + $0x38] sm:$0xff] }
  0x13   : > { %v207_v37 = vsel %vm193_vm0, %v178_v28, 0  ;;  %v210_v38 = vsel %vm193_vm0, %v179_v29, 0  ;;  %v1488_v42 = vand.u32 4294901760, %v204_v36  ;;  %v213_v55 = vsel %vm193_vm0, %v180_v43, 0 }
  0x14   : > { %v1483_v39 = vsub.f32 %v195_v24, %v1471_v31  ;;  %v1486_v40 = vsub.f32 %v198_v25, %v1473_v32  ;;  %v1492_v44 = vsub.f32 %v201_v26, %v1477_v35  ;;  %v1494_v45 = vand.u32 4294901760, %v207_v37 }
  0x15   : > { %v1496_v46 = vand.u32 4294901760, %v210_v38  ;;  %v1501_v50 = vsub.f32 %v204_v36, %v1488_v42  ;;  %v1518_v63 = vand.u32 4294901760, %v213_v55  ;;  %v216_v14 = vsel %vm193_vm0, %v181_v0, 0 }
  0x16   : > { %v289_v48 = vand.u32 4294901760, %v1483_v39  ;;  %v299_v49 = vand.u32 4294901760, %v1486_v40  ;;  %v309_v52 = vand.u32 4294901760, %v1492_v44  ;;  %v1506_v53 = vsub.f32 %v207_v37, %v1494_v45 }
  0x17   : > { %v1509_v54 = vsub.f32 %v210_v38, %v1496_v46  ;;  %v319_v58 = vand.u32 4294901760, %v1501_v50  ;;  %v1524_v7 = vsub.f32 %v213_v55, %v1518_v63  ;;  %v357_v20 = vand.u32 4294901760, %v216_v14 }
  0x18   : > { %1221 = vmatprep.mubr.f32.mxu0 %v289_v48  ;;  %v290_v56 = vsub.f32 %v1483_v39, %v289_v48  ;;  %v300_v57 = vsub.f32 %v1486_v40, %v299_v49  ;;  %v310_v60 = vsub.f32 %v1492_v44, %v309_v52  ;;  %v329_v61 = vand.u32 4294901760, %v1506_v53 }
  0x19   : > { %1222 = vmatmul.mubr.f32.vlgmr.msra.gmra.mrb[0].mxu0 %v299_v49  ;;  %v339_v62 = vand.u32 4294901760, %v1509_v54  ;;  %v320_v3 = vsub.f32 %v1501_v50, %v319_v58  ;;  %v349_v18 = vand.u32 4294901760, %v1524_v7 }
  0x1a   : > { %v291_v1 = vand.u32 4294901760, %v290_v56  ;;  %1224 = vmatprep.mubr.f32.mxu0 %v309_v52  ;;  %v301_v2 = vand.u32 4294901760, %v300_v57  ;;  %1308 = vmatpush3.bf16.msra.mxu0 %v1305_v22  ;;  %v311_v4 = vand.u32 4294901760, %v310_v60  ;;  %v330_v5 = vsub.f32 %v1506_v53, %v329_v61 }
  0x1b   : > { %v321_v17 = vand.u32 4294901760, %v320_v3  ;;  %v340_v19 = vsub.f32 %v1509_v54, %v339_v62  ;;  %v358_v22 = vsub.f32 %v216_v14, %v357_v20  ;;  %v350_v24 = vsub.f32 %v1524_v7, %v349_v18  ;;  %1310 = vmatprep.subr.bf16.mxu0 %v1309_v15 }
  0x1c   : > { %1161 = vmatprep.mubr.f32.mxu1 %v291_v1  ;;  %v331_v21 = vand.u32 4294901760, %v330_v5 }
  0x1d   : > { %1162 = vmatmul.mubr.f32.vlgmr.msra.gmra.mrb[0].mxu1 %v301_v2  ;;  %1225 = vmatmul.mubr.f32.gmra.mrb[2].mxu0 %v319_v58  ;;  %v341_v23 = vand.u32 4294901760, %v340_v19  ;;  %v359_v25 = vand.u32 4294901760, %v358_v22  ;;  %v351_v26 = vand.u32 4294901760, %v350_v24 }
  0x1e   : > { %1284 = vmatpush3.bf16.msra.mxu1 %v1281_v41  ;;  %1164 = vmatprep.mubr.f32.mxu1 %v311_v4 }
  0x1f   : > { %1227 = vmatprep.mubr.f32.mxu0 %v329_v61  ;;  %1286 = vmatprep.subr.bf16.mxu1 %v1285_v6  ;;  %v360_v27 = vsub.f32 %v358_v22, %v359_v25 }
  0x20   : > { %1312 = vmatpush3.bf16.msra.mxu0 %v1309_v15 }
  0x21   : > { %1165 = vmatmul.mubr.f32.gmra.mrb[2].mxu1 %v321_v17  ;;  %1228 = vmatmul.mubr.f32.gmra.mrb[4].mxu0 %v339_v62  ;;  %v361_v28 = vand.u32 4294901760, %v360_v27 }
  0x22   : > { %1167 = vmatprep.mubr.f32.mxu1 %v331_v21  ;;  %1230 = vmatprep.mubr.f32.mxu0 %v349_v18 }
  0x23   : > { %1288 = vmatpush3.bf16.msra.mxu1 %v1285_v6  ;;  %1314 = vmatprep.subr.bf16.mxu0 %v1425_v8 }
  0x24   : > { %1290 = vmatprep.subr.bf16.mxu1 %v1289_v16 }
  0x25   : > { %1168 = vmatmul.mubr.f32.gmra.mrb[4].mxu1 %v341_v23  ;;  %1231 = vmatmul.mubr.f32.gmra.mrb[6].mxu0 %v359_v25 }
  0x26   : > { %1170 = vmatprep.mubr.f32.mxu1 %v351_v26  ;;  %1241 = vmatprep.mubr.f32.mxu0 %v1471_v31 }
  0x29   : > { %1171 = vmatmul.mubr.f32.gmra.mrb[6].mxu1 %v361_v28  ;;  %1242 = vmatmul.mubr.f32.vlgmr.msra.gmra.mrb[0].mxu0 %v1473_v32 }
  0x2a   : > { %1181 = vmatprep.mubr.f32.mxu1 %v1471_v31  ;;  %1244 = vmatprep.mubr.f32.mxu0 %v1477_v35 }
  0x2b   : > { %1316 = vmatpush3.bf16.msra.mxu0 %v1425_v8 }
  0x2c   : > { %1318 = vmatprep.subr.bf16.mxu0 %v1435_v12 }
  0x2d   : > { %1182 = vmatmul.mubr.f32.vlgmr.msra.gmra.mrb[0].mxu1 %v1473_v32  ;;  %1245 = vmatmul.mubr.f32.gmra.mrb[2].mxu0 %v1488_v42 }
  0x2e   : > { %1292 = vmatpush3.bf16.msra.mxu1 %v1289_v16  ;;  %1184 = vmatprep.mubr.f32.mxu1 %v1477_v35 }
  0x2f   : > { %1247 = vmatprep.mubr.f32.mxu0 %v1494_v45  ;;  %1294 = vmatprep.subr.bf16.mxu1 %v1293_v9 }
  0x30   : > { %1320 = vmatpush3.bf16.msra.mxu0 %v1435_v12 }
  0x31   : > { %1185 = vmatmul.mubr.f32.gmra.mrb[2].mxu1 %v1488_v42  ;;  %1248 = vmatmul.mubr.f32.gmra.mrb[4].mxu0 %v1496_v46 }
  0x32   : > { %1187 = vmatprep.mubr.f32.mxu1 %v1494_v45  ;;  %1250 = vmatprep.mubr.f32.mxu0 %v1518_v63 }
  0x33   : > { %1296 = vmatpush3.bf16.msra.mxu1 %v1293_v9 }
  0x35   : > { %1188 = vmatmul.mubr.f32.gmra.mrb[4].mxu1 %v1496_v46  ;;  %1251 = vmatmul.mubr.f32.gmra.mrb[6].mxu0 %v357_v20 }
  0x36   : > { %1190 = vmatprep.mubr.f32.mxu1 %v1518_v63  ;;  %1261 = vmatprep.mubr.f32.mxu0 %v1471_v31 }
  0x39   : > { %1191 = vmatmul.mubr.f32.gmra.mrb[6].mxu1 %v357_v20  ;;  %1262 = vmatmul.mubr.f32.vlgmr.msra.gmra.mrb[0].mxu0 %v1473_v32 }
  0x3a   : > { %1201 = vmatprep.mubr.f32.mxu1 %v1483_v39  ;;  %1264 = vmatprep.mubr.f32.mxu0 %v1477_v35 }
  0x3d   : > { %1202 = vmatmul.mubr.f32.vlgmr.msra.gmra.mrb[0].mxu1 %v1486_v40  ;;  %1265 = vmatmul.mubr.f32.gmra.mrb[2].mxu0 %v1488_v42 }
  0x3e   : > { %1204 = vmatprep.mubr.f32.mxu1 %v1492_v44  ;;  %1267 = vmatprep.mubr.f32.mxu0 %v1494_v45 }
  0x41   : > { %1205 = vmatmul.mubr.f32.gmra.mrb[2].mxu1 %v1501_v50  ;;  %1268 = vmatmul.mubr.f32.gmra.mrb[4].mxu0 %v1496_v46 }
  0x42   : > { %1207 = vmatprep.mubr.f32.mxu1 %v1506_v53  ;;  %1270 = vmatprep.mubr.f32.mxu0 %v1518_v63 }
  0x45   : > { %1208 = vmatmul.mubr.f32.gmra.mrb[4].mxu1 %v1509_v54  ;;  %1271 = vmatmul.mubr.f32.gmra.mrb[6].mxu0 %v357_v20 }
  0x46   : > { %1210 = vmatprep.mubr.f32.mxu1 %v1524_v7 }
  0x49   : > { %1211 = vmatmul.mubr.f32.gmra.mrb[6].mxu1 %v358_v22 }
 0x10c   : > { %v1263_v8 = vpop.f32.mrb[0].mxu0 }
 0x10d   : > { %v958_v10 = vpop.f32.mrb[1].mxu0 }
 0x110   : > { %v1203_v12 = vpop.f32.mrb[0].mxu1  ;;  %v1266_v13 = vpop.f32.mrb[2].mxu0 }
 0x111   : > { %v1321_v29 = vadd.f32 %v1203_v12, %v1078_v11  ;;  %v576_v30 = vpop.f32.mrb[1].mxu1  ;;  %v970_v31 = vpop.f32.mrb[3].mxu0 }
 0x112   : > { %v1323_v32 = vadd.f32 %v1078_v11, %v576_v30 }
 0x113   : > { %v1322_v33 = vadd.f32 %v1321_v29, %v1263_v8 }
 0x114   : > { %v1324_v34 = vadd.f32 %v1323_v32, %v958_v10  ;;  %v1206_v35 = vpop.f32.mrb[2].mxu1  ;;  %v1269_v36 = vpop.f32.mrb[4].mxu0 }
 0x115   : > { %1006 = vst.msk [vmem:[%s1576_s4 + $0x8] sm:$0xff] %vm1004_vm1, %v1322_v33  ;;  %v1325_v37 = vadd.f32 %v1206_v35, %v1078_v11  ;;  %v590_v38 = vpop.f32.mrb[3].mxu1  ;;  %v982_v39 = vpop.f32.mrb[5].mxu0 }
 0x116   : > { %1005 = vst.msk [vmem:[%s1576_s4] sm:$0xff] %vm1004_vm1, %v1324_v34  ;;  %v1327_v40 = vadd.f32 %v1078_v11, %v590_v38 }
 0x117   : > { %v1326_v41 = vadd.f32 %v1325_v37, %v1266_v13 }
 0x118   : > { %v1328_v42 = vadd.f32 %v1327_v40, %v970_v31  ;;  %v1209_v43 = vpop.f32.mrb[4].mxu1  ;;  %v1272_v44 = vpop.f32.mrb[6].mxu0 }
 0x119   : > { %1008 = vst.msk [vmem:[%s1576_s4 + $0x18] sm:$0xff] %vm1004_vm1, %v1326_v41  ;;  %v1329_v45 = vadd.f32 %v1209_v43, %v1078_v11  ;;  %v604_v46 = vpop.f32.mrb[5].mxu1  ;;  %v994_v47 = vpop.f32.mrb[7].mxu0 }
 0x11a   : > { %1007 = vst.msk [vmem:[%s1576_s4 + $0x10] sm:$0xff] %vm1004_vm1, %v1328_v42  ;;  %v1331_v48 = vadd.f32 %v1078_v11, %v604_v46 }
 0x11b   : > { %v1330_v49 = vadd.f32 %v1329_v45, %v1269_v36 }
 0x11c   : > { %v1332_v50 = vadd.f32 %v1331_v48, %v982_v39  ;;  %v1212_v51 = vpop.f32.mrb[6].mxu1 }
 0x11d   : > { %1010 = vst.msk [vmem:[%s1576_s4 + $0x28] sm:$0xff] %vm1004_vm1, %v1330_v49  ;;  %v1333_v52 = vadd.f32 %v1212_v51, %v1078_v11  ;;  %v618_v53 = vpop.f32.mrb[7].mxu1 }
 0x11e   : > { %1009 = vst.msk [vmem:[%s1576_s4 + $0x20] sm:$0xff] %vm1004_vm1, %v1332_v50  ;;  %v1335_v54 = vadd.f32 %v1078_v11, %v618_v53 }
 0x11f   : > { %v1334_v55 = vadd.f32 %v1333_v52, %v1272_v44 }
 0x120   : > { %v1336_v56 = vadd.f32 %v1335_v54, %v994_v47 }
 0x121   : > { %1012 = vst.msk [vmem:[%s1576_s4 + $0x38] sm:$0xff] %vm1004_vm1, %v1334_v55 }
 0x122   : > { %1011 = vst.msk [vmem:[%s1576_s4 + $0x30] sm:$0xff] %vm1004_vm1, %v1336_v56 }
 0x123 PF: > { %s13_s12 = sadd.s32 1, %s1383_s12  }
 0x124   : > { %p10_p4 = scmp.ge.s32.totalorder %s13_s12, 4  }
 0x126   :  { %12 = sbr.rel (!%p10_p4) target bundleno = 1 (0x1), region = 62 }

</bundles_post_ra>
